<compile_context>
chip_gen: v6e
topology: v6e:2x2x1
jax: 0.10.0
libtpu: 0.0.40
codegen_flags: <defaults>
</compile_context>

<pallas_src>
import functools

import jax
import jax.numpy as jnp
import numpy as np
from jax.experimental import pallas as pl
from jax.experimental.pallas import tpu as pltpu

LANE = 128           # vreg lane width
MAX_TILE_ROWS = 512  # 512*128*4B = 256 KiB per f32 buffer per pipeline stage


def _round_up(x, m):
    return ((x + m - 1) // m) * m


def _sparse_dropout_kernel(threshold, scale, bits_ref, vals_ref,
                           out_vals_ref, mask_ref):
    # keep  <=>  uniform-u32 >= (1 - kprob) * 2^32   (probability == kprob)
    keep = bits_ref[...] >= jnp.uint32(threshold)
    out_vals_ref[...] = jnp.where(
        keep, vals_ref[...] * jnp.float32(scale), jnp.float32(0.0))
    mask_ref[...] = keep.astype(jnp.int8)


@functools.partial(jax.jit, static_argnames=("kprob",))
def sparse_dropout_pallas(values, bits, kprob=0.5):
    """Per-nonzero dropout + 1/kprob rescale.

    values: (NNZ,) float32.   bits: (NNZ,) uint32 random bits.
    Returns (scaled_values (NNZ,) float32, keep_mask (NNZ,) int8).
    """
    assert 0.0 < kprob <= 1.0
    nnz = values.shape[0]
    rows = pl.cdiv(nnz, LANE)
    # Tile over rows; multiples of 32 keep the int8 mask on its native
    # (32, 128) tile and comfortably fit v7x's 64 MiB VMEM when double-buffered.
    tile_r = MAX_TILE_ROWS if rows >= MAX_TILE_ROWS else _round_up(rows, 32)
    padded_rows = _round_up(rows, tile_r)
    pad = padded_rows * LANE - nnz

    vals2d = jnp.pad(values, (0, pad)).reshape(padded_rows, LANE)
    bits2d = jnp.pad(bits, (0, pad)).reshape(padded_rows, LANE)

    threshold = min(int(round((1.0 - kprob) * 2.0 ** 32)), 2 ** 32 - 1)
    scale = 1.0 / kprob
    kernel = functools.partial(_sparse_dropout_kernel, threshold, scale)

    grid = (padded_rows // tile_r,)
    blk = lambda i: (i, 0)
    out_vals, mask = pl.pallas_call(
        kernel,
        grid=grid,
        in_specs=[
            pl.BlockSpec((tile_r, LANE), blk),   # random bits
            pl.BlockSpec((tile_r, LANE), blk),   # values
        ],
        out_specs=(
            pl.BlockSpec((tile_r, LANE), blk),   # scaled values
            pl.BlockSpec((tile_r, LANE), blk),   # keep mask (int8)
        ),
        out_shape=(
            jax.ShapeDtypeStruct((padded_rows, LANE), jnp.float32),
            jax.ShapeDtypeStruct((padded_rows, LANE), jnp.int8),
        ),
        # values (input index 1) reuses the scaled-values output buffer (out 0).
        input_output_aliases={1: 0},
        compiler_params=pltpu.CompilerParams(
            dimension_semantics=("parallel",)),
    )(bits2d, vals2d)

    return out_vals.reshape(-1)[:nnz], mask.reshape(-1)[:nnz]


def sparse_dropout(indices, values, key, kprob=0.5):
    """Full SparseDropout forward: returns (rc, val) of the kept nonzeros,
    matching torch.sparse.FloatTensor(rc, val)."""
    nnz = values.shape[0]
    bits = jax.random.bits(key, (nnz,), dtype=jnp.uint32)
    scaled, mask = sparse_dropout_pallas(values, bits, kprob)
    # Single sync + single device->host transfer, then numpy compaction.
    scaled_np, mask_np = jax.device_get(jax.block_until_ready((scaled, mask)))
    keep = mask_np.astype(bool)
    rc = np.asarray(indices)[:, keep]
    val = scaled_np[keep]
    return rc, val


if __name__ == "__main__":
    root = jax.random.PRNGKey(0)
    k_idx, k_val, k_drop = jax.random.split(root, 3)

    # Synthetic sparse tensor: dense shape (64, 64), NNZ = 1024 nonzeros.
    NNZ = 1024
    DENSE_DIM = 64
    KPROB = 0.5
    indices = np.asarray(
        jax.random.randint(k_idx, (2, NNZ), 0, DENSE_DIM, dtype=jnp.int32))
    values = jax.random.normal(k_val, (NNZ,), dtype=jnp.float32)

    # Run the Pallas kernel once and check it against the reference semantics.
    bits = jax.random.bits(k_drop, (NNZ,), dtype=jnp.uint32)
    scaled, mask = jax.block_until_ready(
        sparse_dropout_pallas(values, bits, KPROB))
    keep = np.asarray(mask).astype(bool)
    ref = np.where(keep, np.asarray(values) * (1.0 / KPROB), 0.0)
    np.testing.assert_allclose(np.asarray(scaled), ref, rtol=1e-6, atol=0.0)
    assert 0.3 < keep.mean() < 0.7, "keep rate far from kprob"

    # Full forward.
    rc, val = sparse_dropout(indices, values, k_drop, kprob=KPROB)
    assert rc.shape[0] == 2
    assert rc.shape[1] == val.shape[0]
    assert 0 < val.shape[0] <= NNZ
    assert np.all(np.isfinite(val))
    print("KERNEL_OK")
</pallas_src>

<mosaic_0001>
module attributes {stable_mosaic.version = 11 : i64} {
  func.func @_sparse_dropout_kernel(%arg0: i32, %arg1: memref<32x128xi32, #tpu.memory_space<vmem>>, %arg2: memref<32x128xf32, #tpu.memory_space<vmem>>, %arg3: memref<32x128xf32, #tpu.memory_space<vmem>>, %arg4: memref<32x128xi8, #tpu.memory_space<vmem>>) attributes {dimension_semantics = [#tpu.dimension_semantics<parallel>], iteration_bounds = array<i64: 1>, scalar_prefetch = 0 : i64, scratch_operands = 0 : i64, tpu.core_type = #tpu.core_type<tc>, window_params = [{transform_indices = @transform_0, window_bounds = array<i64: 32, 128>}, {transform_indices = @transform_1, window_bounds = array<i64: 32, 128>}, {transform_indices = @transform_2, window_bounds = array<i64: 32, 128>}, {transform_indices = @transform_3, window_bounds = array<i64: 32, 128>}]} {
    %c0 = arith.constant 0 : index
    %c0_0 = arith.constant 0 : index
    %0 = vector.load %arg1[%c0, %c0_0] : memref<32x128xi32, #tpu.memory_space<vmem>>, vector<32x128xi32>
    %c-2147483648_i32 = arith.constant -2147483648 : i32
    %1 = vector.broadcast %c-2147483648_i32 : i32 to vector<32x128xi32>
    %2 = arith.cmpi uge, %0, %1 : vector<32x128xi32>
    %c0_1 = arith.constant 0 : index
    %c0_2 = arith.constant 0 : index
    %3 = vector.load %arg2[%c0_1, %c0_2] : memref<32x128xf32, #tpu.memory_space<vmem>>, vector<32x128xf32>
    %cst = arith.constant 2.000000e+00 : f32
    %4 = vector.broadcast %cst : f32 to vector<32x128xf32>
    %5 = arith.mulf %3, %4 : vector<32x128xf32>
    %cst_3 = arith.constant 0.000000e+00 : f32
    %6 = vector.broadcast %cst_3 : f32 to vector<32x128xf32>
    %7 = arith.select %2, %5, %6 : vector<32x128xi1>, vector<32x128xf32>
    %c0_4 = arith.constant 0 : index
    %c0_5 = arith.constant 0 : index
    %8 = vector.load %arg3[%c0_4, %c0_5] : memref<32x128xf32, #tpu.memory_space<vmem>>, vector<32x128xf32>
    tpu.vector_store %arg3[%c0_4, %c0_5], %7 {strides = array<i32>} : memref<32x128xf32, #tpu.memory_space<vmem>>, vector<32x128xf32>,
    %9 = arith.extui %2 : vector<32x128xi1> to vector<32x128xi8>
    %c0_6 = arith.constant 0 : index
    %c0_7 = arith.constant 0 : index
    %10 = vector.load %arg4[%c0_6, %c0_7] : memref<32x128xi8, #tpu.memory_space<vmem>>, vector<32x128xi8>
    tpu.vector_store %arg4[%c0_6, %c0_7], %9 {strides = array<i32>} : memref<32x128xi8, #tpu.memory_space<vmem>>, vector<32x128xi8>,
    return
  }
  func.func @transform_0(%arg0: i32) -> (i32, i32) {
    %c0_i32 = arith.constant 0 : i32
    %c0_i32_0 = arith.constant 0 : i32
    return %arg0, %c0_i32 : i32, i32
  }
  func.func @transform_1(%arg0: i32) -> (i32, i32) {
    %c0_i32 = arith.constant 0 : i32
    %c0_i32_0 = arith.constant 0 : i32
    return %arg0, %c0_i32 : i32, i32
  }
  func.func @transform_2(%arg0: i32) -> (i32, i32) {
    %c0_i32 = arith.constant 0 : i32
    %c0_i32_0 = arith.constant 0 : i32
    return %arg0, %c0_i32 : i32, i32
  }
  func.func @transform_3(%arg0: i32) -> (i32, i32) {
    %c0_i32 = arith.constant 0 : i32
    %c0_i32_0 = arith.constant 0 : i32
    return %arg0, %c0_i32 : i32, i32
  }
}

</mosaic_0001>

<bundles_post_ra>
// kernel: sparse_dropout_pallas.1
= control target key start
LH: loop header
LB: loop body
LE: loop exit
PB: predicated region body
PF: predicated region fallthrough
CT: control target
= control target key end

     0   :  { %v68_v17 = vmov 0   ;;  %s143_s0 = inlined_call_operand.vmem [shape: u32[32,128], index: 0, kind: input, shape index: {}]   ;;  %s144_s1 = inlined_call_operand.vmem [shape: f32[32,128], index: 1, kind: input, shape index: {}, may-alias: {1,2}]   ;;  %s145_s2 = inlined_call_operand.vmem [shape: f32[32,128], index: 2, kind: output, shape index: {0}, may-alias: {1,2}]   ;;  %s146_s3 = inlined_call_operand.vmem [shape: s8[32,128], index: 3, kind: output, shape index: {1}]  }
   0x1   :  { %v15_v0 = vld [vmem:[%s143_s0] sm:$0xff]  ;;  %v16_v2 = vld [vmem:[%s143_s0 + $0x8] sm:$0xff]  ;;  %v17_v5 = vld [vmem:[%s143_s0 + $0x10] sm:$0xff] }
   0x2   :  { %v23_v1 = vld [vmem:[%s144_s1] sm:$0xff]  ;;  %vm19_vm0 = vcmp.ge.u32.totalorder %v15_v0, 2147483648  ;;  %vm20_vm1 = vcmp.ge.u32.totalorder %v16_v2, 2147483648  ;;  %v24_v4 = vld [vmem:[%s144_s1 + $0x8] sm:$0xff]  ;;  %v25_v6 = vld [vmem:[%s144_s1 + $0x10] sm:$0xff]  ;;  %vm21_vm3 = vcmp.ge.u32.totalorder %v17_v5, 2147483648 }
   0x3   :  { %v27_v3 = vmul.f32 2.0, %v23_v1  ;;  %v28_v7 = vmul.f32 2.0, %v24_v4  ;;  %vm107_vm2 = vmpackc.low %vm20_vm1, %vm19_vm0  ;;  %v29_v9 = vmul.f32 2.0, %v25_v6  ;;  %v18_v10 = vld [vmem:[%s143_s0 + $0x18] sm:$0xff] }
   0x4   :  { %v26_v11 = vld [vmem:[%s144_s1 + $0x18] sm:$0xff]  ;;  %vm22_vm4 = vcmp.ge.u32.totalorder %v18_v10, 2147483648 }
   0x5   :  { %v31_v12 = vsel %vm19_vm0, %v27_v3, 0.0  ;;  %v30_v13 = vmul.f32 2.0, %v26_v11  ;;  %v32_v14 = vsel %vm20_vm1, %v28_v7, 0.0  ;;  %v33_v15 = vsel %vm21_vm3, %v29_v9, 0.0  ;;  %vm40_vm5 = vmpackc.low %vm22_vm4, %vm21_vm3 }
   0x6   :  { %35 = vst [vmem:[%s145_s2] sm:$0xff] %v31_v12  ;;  %36 = vst [vmem:[%s145_s2 + $0x8] sm:$0xff] %v32_v14 }
   0x7   :  { %37 = vst [vmem:[%s145_s2 + $0x10] sm:$0xff] %v33_v15  ;;  %v34_v16 = vsel %vm22_vm4, %v30_v13, 0.0  ;;  %vm41_vm6 = vmpackc.even %vm40_vm5, %vm107_vm2 }
   0x8   :  { %38 = vst [vmem:[%s145_s2 + $0x18] sm:$0xff] %v34_v16  ;;  %v42_v18 = vsel %vm41_vm6, 16843009, %v68_v17 }
   0x9   :  { %v43_v19 = vunpack.c.0.s8 %v42_v18  ;;  %v44_v20 = vunpack.c.1.s8 %v42_v18  ;;  %v45_v21 = vunpack.c.2.s8 %v42_v18  ;;  %v46_v22 = vunpack.c.3.s8 %v42_v18 }
   0xb   :  { %v47_v23 = vpack.c.b16 %v43_v19, %v43_v19  ;;  %v49_v24 = vpack.c.b16 %v44_v20, %v44_v20  ;;  %v51_v25 = vpack.c.b16 %v45_v21, %v45_v21  ;;  %v53_v26 = vpack.c.b16 %v46_v22, %v46_v22 }
   0xd   :  { %v48_v27 = vpack.c.b8 %v47_v23, %v47_v23  ;;  %v50_v28 = vpack.c.b8 %v49_v24, %v49_v24  ;;  %v52_v29 = vpack.c.b8 %v51_v25, %v51_v25  ;;  %v54_v30 = vpack.c.b8 %v53_v26, %v53_v26 }
   0xf   :  { %55 = vst [vmem:[%s146_s3] sm:$0x3] %v48_v27  ;;  %56 = vst [vmem:[%s146_s3 + $0x2] sm:$0x3] %v50_v28 }
  0x10   :  { %57 = vst [vmem:[%s146_s3 + $0x4] sm:$0x3] %v52_v29  ;;  %58 = vst [vmem:[%s146_s3 + $0x6] sm:$0x3] %v54_v30 }

</bundles_post_ra>
